<compile_context>
chip_gen: v5e
topology: v5e:2x2
jax: 0.10.0
libtpu: 0.0.40
codegen_flags: <defaults>
</compile_context>

<pallas_src>
import functools

import jax
import jax.numpy as jnp
from jax.experimental import pallas as pl
from jax.experimental.pallas import tpu as pltpu

LANE = 128
SUBLANE = 8


def _pad_axis(a, axis, mult):
    """Zero-pad `axis` of `a` up to a multiple of `mult`."""
    size = a.shape[axis]
    pad = (-size) % mult
    if pad == 0:
        return a
    widths = [(0, 0)] * a.ndim
    widths[axis % a.ndim] = (0, pad)
    return jnp.pad(a, widths)


def autoencoder_kernel(x_ref, w12_ref, b12_ref, w34_ref, b34_ref, out_ref):
    # relu(x @ W12 + b12) @ W34 + b34 — bf16 MXU operands, f32 accumulation,
    # bias add + ReLU kept in f32 (no bf16 VPU on v5e).
    h = jnp.dot(x_ref[...], w12_ref[...],
                preferred_element_type=jnp.float32) + b12_ref[...]
    h = jnp.maximum(h, 0.0)
    y = jnp.dot(h.astype(jnp.bfloat16), w34_ref[...],
                preferred_element_type=jnp.float32) + b34_ref[...]
    out_ref[...] = y.astype(out_ref.dtype)


def _choose_batch_tile(B):
    # >=2 grid steps once B >= 256 (feeds both v7x TensorCores); tiles capped
    # at 256 rows to bound the live (tile, Hp) f32 intermediate between dots.
    if B >= 512:
        return 256
    if B >= 256:
        return 128
    return max(SUBLANE, ((B + SUBLANE - 1) // SUBLANE) * SUBLANE)


@functools.partial(jax.jit,
                   static_argnames=("batch_tile", "single_buffer_weights"))
def autoencoder_forward(x, params, *, batch_tile=None,
                        single_buffer_weights=True):
    """Full encoder+decoder forward in one Pallas kernel (tiled over batch)."""
    (w1, b1), (w2, b2), (w3, b3), (w4, b4) = params
    B, input_dim = x.shape

    # --- Exact algebraic fusion of the activation-free Linear pairs --------
    w12 = w1 @ w2
    b12 = b1 @ w2 + b2
    w34 = w3 @ w4
    b34 = b3 @ w4 + b4

    # --- Lane-dense padding (padded rows/cols are zero -> exact math) ------
    x_p = _pad_axis(x, 1, LANE)                                  # (B, Dp)
    w12_p = _pad_axis(_pad_axis(w12, 0, LANE), 1, LANE)          # (Dp, Hp)
    b12_p = _pad_axis(b12, 1, LANE)                              # (1, Hp)
    w34_p = _pad_axis(_pad_axis(w34, 0, LANE), 1, LANE)          # (Hp, Dp)
    b34_p = _pad_axis(b34, 1, LANE)                              # (1, Dp)
    Dp = x_p.shape[1]
    Hp = w12_p.shape[1]

    # bf16 operands for the MXU; f32 biases / accumulation / output.
    x_p = x_p.astype(jnp.bfloat16)
    w12_p = w12_p.astype(jnp.bfloat16)
    w34_p = w34_p.astype(jnp.bfloat16)
    b12_p = b12_p.astype(jnp.float32)
    b34_p = b34_p.astype(jnp.float32)

    # --- Batch tiling: always tiled, batch padded to a tile multiple -------
    if batch_tile is None:
        batch_tile = _choose_batch_tile(B)
    assert batch_tile % SUBLANE == 0
    Bp = pl.cdiv(B, batch_tile) * batch_tile
    x_p = _pad_axis(x_p, 0, batch_tile)                          # (Bp, Dp)
    grid = (Bp // batch_tile,)

    use_buffered = single_buffer_weights and hasattr(pl, "Buffered")
    weight_pipeline = pl.Buffered(1) if use_buffered else None

    def w_spec(shape):
        # Grid-invariant operands: constant index_map, single pipeline buffer.
        return pl.BlockSpec(shape, lambda i: (0, 0),
                            pipeline_mode=weight_pipeline)

    # --- VMEM budget: weights (x buffer count) + double-buffered x/out tiles
    #     + f32 intermediate, with 2x headroom, capped at 64 MiB (legal on
    #     every generation; v7x physical VMEM is 64 MiB per TensorCore). -----
    wbuf = 1 if use_buffered else 2
    footprint = (
        wbuf * (w12_p.size * 2 + w34_p.size * 2
                + b12_p.size * 4 + b34_p.size * 4)
        + 2 * (batch_tile * Dp * 2)      # x tile, double-buffered bf16
        + 2 * (batch_tile * Dp * 4)      # out tile, double-buffered f32
        + batch_tile * Hp * 4            # h intermediate
    )
    vmem_limit = int(min(64 * 1024 * 1024,
                         max(32 * 1024 * 1024, 2 * footprint)))

    flops = 2 * Bp * (Dp * Hp + Hp * Dp)
    bytes_accessed = (x_p.size * 2 + w12_p.size * 2 + w34_p.size * 2
                      + b12_p.size * 4 + b34_p.size * 4 + Bp * Dp * 4)
    cost = pl.CostEstimate(flops=flops, transcendentals=0,
                           bytes_accessed=bytes_accessed)

    out_p = pl.pallas_call(
        autoencoder_kernel,
        out_shape=jax.ShapeDtypeStruct((Bp, Dp), jnp.float32),
        grid_spec=pltpu.PrefetchScalarGridSpec(
            num_scalar_prefetch=0,
            grid=grid,
            in_specs=[
                pl.BlockSpec((batch_tile, Dp), lambda i: (i, 0)),
                w_spec((Dp, Hp)), w_spec((1, Hp)),
                w_spec((Hp, Dp)), w_spec((1, Dp)),
            ],
            out_specs=pl.BlockSpec((batch_tile, Dp), lambda i: (i, 0)),
        ),
        compiler_params=pltpu.CompilerParams(
            dimension_semantics=("parallel",),
            vmem_limit_bytes=vmem_limit,
        ),
        cost_estimate=cost,
    )(x_p, w12_p, b12_p, w34_p, b34_p)

    # Strip batch/lane padding (layout plumbing, fused under the same jit).
    # NOTE: output stays f32 to match the PyTorch module; emitting bf16 here
    # would halve the dominant HBM writeback if the consumer tolerates it.
    return out_p[:B, :input_dim].astype(x.dtype)


def init_params(key, input_dim, encoding_dim):
    """Deterministic init mimicking nn.Linear's U(-1/sqrt(fan_in), +1/sqrt(fan_in)).
    Weights stored as (in_features, out_features) so y = x @ W + b."""
    hid = encoding_dim // 2
    dims = [(input_dim, encoding_dim),
            (encoding_dim, hid),
            (hid, encoding_dim),
            (encoding_dim, input_dim)]
    params = []
    for (fan_in, fan_out) in dims:
        key, kw, kb = jax.random.split(key, 3)
        bound = 1.0 / jnp.sqrt(fan_in)
        w = jax.random.uniform(kw, (fan_in, fan_out), jnp.float32, -bound, bound)
        b = jax.random.uniform(kb, (1, fan_out), jnp.float32, -bound, bound)
        params.append((w, b))
    return params


def reference_forward(x, params):
    """Unfused f32 reference matching the PyTorch module layer-by-layer."""
    (w1, b1), (w2, b2), (w3, b3), (w4, b4) = params
    h = x @ w1 + b1
    h = h @ w2 + b2
    h = jnp.maximum(h, 0.0)
    h = h @ w3 + b3
    return h @ w4 + b4


if __name__ == "__main__":
    batch, input_dim, encoding_dim = 16, 64, 32
    key = jax.random.PRNGKey(0)
    key, kx = jax.random.split(key)
    x = jax.random.normal(kx, (batch, input_dim), jnp.float32)
    params = init_params(key, input_dim, encoding_dim)

    try:
        out = jax.block_until_ready(autoencoder_forward(x, params))
    except Exception:
        # Fallback: default double-buffered weight specs if this JAX build
        # rejects pipeline_mode=pl.Buffered(1) on BlockSpec.
        out = jax.block_until_ready(
            autoencoder_forward(x, params, single_buffer_weights=False))

    ref = reference_forward(x, params)
    assert out.shape == (batch, input_dim)
    # bf16 operands (f32 accumulate) + fused weights => looser tolerance than f32.
    assert jnp.allclose(out, ref, atol=3e-2, rtol=3e-2)
    print("KERNEL_OK")
</pallas_src>

<mosaic_0001>
module attributes {stable_mosaic.version = 11 : i64} {
  func.func @autoencoder_kernel(%arg0: i32, %arg1: memref<16x128xbf16, #tpu.memory_space<vmem>>, %arg2: memref<128x128xbf16, #tpu.memory_space<vmem>>, %arg3: memref<1x128xf32, #tpu.memory_space<vmem>>, %arg4: memref<128x128xbf16, #tpu.memory_space<vmem>>, %arg5: memref<1x128xf32, #tpu.memory_space<vmem>>, %arg6: memref<16x128xf32, #tpu.memory_space<vmem>>) attributes {dimension_semantics = [#tpu.dimension_semantics<parallel>], iteration_bounds = array<i64: 1>, scalar_prefetch = 0 : i64, scratch_operands = 0 : i64, tpu.core_type = #tpu.core_type<tc>, window_params = [{transform_indices = @transform_0, window_bounds = array<i64: 16, 128>}, {pipeline_mode = #tpu.pipeline_mode<synchronous>, transform_indices = @transform_1, window_bounds = array<i64: 128, 128>}, {pipeline_mode = #tpu.pipeline_mode<synchronous>, transform_indices = @transform_2, window_bounds = array<i64: 1, 128>}, {pipeline_mode = #tpu.pipeline_mode<synchronous>, transform_indices = @transform_3, window_bounds = array<i64: 128, 128>}, {pipeline_mode = #tpu.pipeline_mode<synchronous>, transform_indices = @transform_4, window_bounds = array<i64: 1, 128>}, {transform_indices = @transform_5, window_bounds = array<i64: 16, 128>}]} {
    %c0 = arith.constant 0 : index
    %c0_0 = arith.constant 0 : index
    %0 = vector.load %arg1[%c0, %c0_0] : memref<16x128xbf16, #tpu.memory_space<vmem>>, vector<16x128xbf16>
    %c0_1 = arith.constant 0 : index
    %c0_2 = arith.constant 0 : index
    %1 = vector.load %arg2[%c0_1, %c0_2] : memref<128x128xbf16, #tpu.memory_space<vmem>>, vector<128x128xbf16>
    %cst = arith.constant dense<0.000000e+00> : vector<16x128xf32>
    %2 = tpu.matmul %0, %1, %cst {dimension_numbers = #tpu.dot_dimension_numbers<[1], [0], [0], [1], [0, 0, 1, 1], [], []>} : vector<16x128xbf16>, vector<128x128xbf16>, vector<16x128xf32> -> vector<16x128xf32>
    %c0_3 = arith.constant 0 : index
    %c0_4 = arith.constant 0 : index
    %3 = vector.load %arg3[%c0_3, %c0_4] : memref<1x128xf32, #tpu.memory_space<vmem>>, vector<1x128xf32>
    %4 = vector.broadcast %3 : vector<1x128xf32> to vector<16x128xf32>
    %5 = arith.addf %2, %4 : vector<16x128xf32>
    %cst_5 = arith.constant 0.000000e+00 : f32
    %6 = vector.broadcast %cst_5 : f32 to vector<16x128xf32>
    %7 = arith.maximumf %5, %6 : vector<16x128xf32>
    %8 = arith.truncf %7 : vector<16x128xf32> to vector<16x128xbf16>
    %c0_6 = arith.constant 0 : index
    %c0_7 = arith.constant 0 : index
    %9 = vector.load %arg4[%c0_6, %c0_7] : memref<128x128xbf16, #tpu.memory_space<vmem>>, vector<128x128xbf16>
    %cst_8 = arith.constant dense<0.000000e+00> : vector<16x128xf32>
    %10 = tpu.matmul %8, %9, %cst_8 {dimension_numbers = #tpu.dot_dimension_numbers<[1], [0], [0], [1], [0, 0, 1, 1], [], []>} : vector<16x128xbf16>, vector<128x128xbf16>, vector<16x128xf32> -> vector<16x128xf32>
    %c0_9 = arith.constant 0 : index
    %c0_10 = arith.constant 0 : index
    %11 = vector.load %arg5[%c0_9, %c0_10] : memref<1x128xf32, #tpu.memory_space<vmem>>, vector<1x128xf32>
    %12 = vector.broadcast %11 : vector<1x128xf32> to vector<16x128xf32>
    %13 = arith.addf %10, %12 : vector<16x128xf32>
    %c0_11 = arith.constant 0 : index
    %c0_12 = arith.constant 0 : index
    %14 = vector.load %arg6[%c0_11, %c0_12] : memref<16x128xf32, #tpu.memory_space<vmem>>, vector<16x128xf32>
    tpu.vector_store %arg6[%c0_11, %c0_12], %13 {strides = array<i32>} : memref<16x128xf32, #tpu.memory_space<vmem>>, vector<16x128xf32>,
    return
  }
  func.func @transform_0(%arg0: i32) -> (i32, i32) {
    %c0_i32 = arith.constant 0 : i32
    %c0_i32_0 = arith.constant 0 : i32
    return %arg0, %c0_i32 : i32, i32
  }
  func.func @transform_1(%arg0: i32) -> (i32, i32) {
    %c0_i32 = arith.constant 0 : i32
    %c0_i32_0 = arith.constant 0 : i32
    %c0_i32_1 = arith.constant 0 : i32
    return %c0_i32, %c0_i32_0 : i32, i32
  }
  func.func @transform_2(%arg0: i32) -> (i32, i32) {
    %c0_i32 = arith.constant 0 : i32
    %c0_i32_0 = arith.constant 0 : i32
    %c0_i32_1 = arith.constant 0 : i32
    return %c0_i32, %c0_i32_0 : i32, i32
  }
  func.func @transform_3(%arg0: i32) -> (i32, i32) {
    %c0_i32 = arith.constant 0 : i32
    %c0_i32_0 = arith.constant 0 : i32
    %c0_i32_1 = arith.constant 0 : i32
    return %c0_i32, %c0_i32_0 : i32, i32
  }
  func.func @transform_4(%arg0: i32) -> (i32, i32) {
    %c0_i32 = arith.constant 0 : i32
    %c0_i32_0 = arith.constant 0 : i32
    %c0_i32_1 = arith.constant 0 : i32
    return %c0_i32, %c0_i32_0 : i32, i32
  }
  func.func @transform_5(%arg0: i32) -> (i32, i32) {
    %c0_i32 = arith.constant 0 : i32
    %c0_i32_0 = arith.constant 0 : i32
    return %arg0, %c0_i32 : i32, i32
  }
}

module attributes {stable_mosaic.version = 11 : i64} {
  func.func @autoencoder_kernel(%arg0: i32, %arg1: memref<16x128xbf16, #tpu.memory_space<vmem>>, %arg2: memref<128x128xbf16, #tpu.memory_space<vmem>>, %arg3: memref<1x128xf32, #tpu.memory_space<vmem>>, %arg4: memref<128x128xbf16, #tpu.memory_space<vmem>>, %arg5: memref<1x128xf32, #tpu.memory_space<vmem>>, %arg6: memref<16x128xf32, #tpu.memory_space<vmem>>) attributes {dimension_semantics = [#tpu.dimension_semantics<parallel>], iteration_bounds = array<i64: 1>, scalar_prefetch = 0 : i64, scratch_operands = 0 : i64, tpu.core_type = #tpu.core_type<tc>, window_params = [{transform_indices = @transform_0, window_bounds = array<i64: 16, 128>}, {pipeline_mode = #tpu.pipeline_mode<synchronous>, transform_indices = @transform_1, window_bounds = array<i64: 128, 128>}, {pipeline_mode = #tpu.pipeline_mode<synchronous>, transform_indices = @transform_2, window_bounds = array<i64: 1, 128>}, {pipeline_mode = #tpu.pipeline_mode<synchronous>, transform_indices = @transform_3, window_bounds = array<i64: 128, 128>}, {pipeline_mode = #tpu.pipeline_mode<synchronous>, transform_indices = @transform_4, window_bounds = array<i64: 1, 128>}, {transform_indices = @transform_5, window_bounds = array<i64: 16, 128>}]} {
    %c0 = arith.constant 0 : index
    %c0_0 = arith.constant 0 : index
    %0 = vector.load %arg1[%c0, %c0_0] : memref<16x128xbf16, #tpu.memory_space<vmem>>, vector<16x128xbf16>
    %c0_1 = arith.constant 0 : index
    %c0_2 = arith.constant 0 : index
    %1 = vector.load %arg2[%c0_1, %c0_2] : memref<128x128xbf16, #tpu.memory_space<vmem>>, vector<128x128xbf16>
    %cst = arith.constant dense<0.000000e+00> : vector<16x128xf32>
    %2 = tpu.matmul %0, %1, %cst {dimension_numbers = #tpu.dot_dimension_numbers<[1], [0], [0], [1], [0, 0, 1, 1], [], []>} : vector<16x128xbf16>, vector<128x128xbf16>, vector<16x128xf32> -> vector<16x128xf32>
    %c0_3 = arith.constant 0 : index
    %c0_4 = arith.constant 0 : index
    %3 = vector.load %arg3[%c0_3, %c0_4] : memref<1x128xf32, #tpu.memory_space<vmem>>, vector<1x128xf32>
    %4 = vector.broadcast %3 : vector<1x128xf32> to vector<16x128xf32>
    %5 = arith.addf %2, %4 : vector<16x128xf32>
    %cst_5 = arith.constant 0.000000e+00 : f32
    %6 = vector.broadcast %cst_5 : f32 to vector<16x128xf32>
    %7 = arith.maximumf %5, %6 : vector<16x128xf32>
    %8 = arith.truncf %7 : vector<16x128xf32> to vector<16x128xbf16>
    %c0_6 = arith.constant 0 : index
    %c0_7 = arith.constant 0 : index
    %9 = vector.load %arg4[%c0_6, %c0_7] : memref<128x128xbf16, #tpu.memory_space<vmem>>, vector<128x128xbf16>
    %cst_8 = arith.constant dense<0.000000e+00> : vector<16x128xf32>
    %10 = tpu.matmul %8, %9, %cst_8 {dimension_numbers = #tpu.dot_dimension_numbers<[1], [0], [0], [1], [0, 0, 1, 1], [], []>} : vector<16x128xbf16>, vector<128x128xbf16>, vector<16x128xf32> -> vector<16x128xf32>
    %c0_9 = arith.constant 0 : index
    %c0_10 = arith.constant 0 : index
    %11 = vector.load %arg5[%c0_9, %c0_10] : memref<1x128xf32, #tpu.memory_space<vmem>>, vector<1x128xf32>
    %12 = vector.broadcast %11 : vector<1x128xf32> to vector<16x128xf32>
    %13 = arith.addf %10, %12 : vector<16x128xf32>
    %c0_11 = arith.constant 0 : index
    %c0_12 = arith.constant 0 : index
    %14 = vector.load %arg6[%c0_11, %c0_12] : memref<16x128xf32, #tpu.memory_space<vmem>>, vector<16x128xf32>
    tpu.vector_store %arg6[%c0_11, %c0_12], %13 {strides = array<i32>} : memref<16x128xf32, #tpu.memory_space<vmem>>, vector<16x128xf32>,
    return
  }
  func.func @transform_0(%arg0: i32) -> (i32, i32) {
    %c0_i32 = arith.constant 0 : i32
    %c0_i32_0 = arith.constant 0 : i32
    return %arg0, %c0_i32 : i32, i32
  }
  func.func @transform_1(%arg0: i32) -> (i32, i32) {
    %c0_i32 = arith.constant 0 : i32
    %c0_i32_0 = arith.constant 0 : i32
    %c0_i32_1 = arith.constant 0 : i32
    return %c0_i32, %c0_i32_0 : i32, i32
  }
  func.func @transform_2(%arg0: i32) -> (i32, i32) {
    %c0_i32 = arith.constant 0 : i32
    %c0_i32_0 = arith.constant 0 : i32
    %c0_i32_1 = arith.constant 0 : i32
    return %c0_i32, %c0_i32_0 : i32, i32
  }
  func.func @transform_3(%arg0: i32) -> (i32, i32) {
    %c0_i32 = arith.constant 0 : i32
    %c0_i32_0 = arith.constant 0 : i32
    %c0_i32_1 = arith.constant 0 : i32
    return %c0_i32, %c0_i32_0 : i32, i32
  }
  func.func @transform_4(%arg0: i32) -> (i32, i32) {
    %c0_i32 = arith.constant 0 : i32
    %c0_i32_0 = arith.constant 0 : i32
    %c0_i32_1 = arith.constant 0 : i32
    return %c0_i32, %c0_i32_0 : i32, i32
  }
  func.func @transform_5(%arg0: i32) -> (i32, i32) {
    %c0_i32 = arith.constant 0 : i32
    %c0_i32_0 = arith.constant 0 : i32
    return %arg0, %c0_i32 : i32, i32
  }
}

</mosaic_0001>

<bundles_post_ra>
// kernel: autoencoder_forward.1
= control target key start
LH: loop header
LB: loop body
LE: loop exit
PB: predicated region body
PF: predicated region fallthrough
CT: control target
= control target key end

     0   :  { %s425_s0 = inlined_call_operand.vmem [shape: bf16[16,128], index: 0, kind: input, shape index: {}]   ;;  %s426_s1 = inlined_call_operand.vmem [shape: bf16[128,128], index: 1, kind: input, shape index: {}]   ;;  %s427_s2 = inlined_call_operand.vmem [shape: f32[1,128], index: 2, kind: input, shape index: {}]   ;;  %s428_s3 = inlined_call_operand.vmem [shape: bf16[128,128], index: 3, kind: input, shape index: {}]   ;;  %s429_s4 = inlined_call_operand.vmem [shape: f32[1,128], index: 4, kind: input, shape index: {}]   ;;  %s430_s5 = inlined_call_operand.hbm [shape: f32[16,128], index: 5, kind: output, shape index: {}]  }
   0x1   :  { %v292_v0 = vld [vmem:[%s426_s1 + $0x38] sm:$0xff]  ;;  %v291_v1 = vld [vmem:[%s426_s1 + $0x30] sm:$0xff] }
   0x2   :  { %97 = vmatpush.bf16.msra.mxu0 %v292_v0  ;;  %v300_v2 = vld [vmem:[%s428_s3 + $0x38] sm:$0xff]  ;;  %v299_v3 = vld [vmem:[%s428_s3 + $0x30] sm:$0xff] }
   0x3   :  { %182 = vmatpush.bf16.msra.mxu1 %v300_v2 }
   0x4   :  { %10 = vsyncpa [#allocation3], 0  ;;  %v290_v4 = vld [vmem:[%s426_s1 + $0x28] sm:$0xff]  ;;  %v289_v6 = vld [vmem:[%s426_s1 + $0x20] sm:$0xff]  ;;  %s333_s7 = smov 128   ;;  %s334_s8 = smov 8  }
   0x5   :  { %v298_v5 = vld [vmem:[%s428_s3 + $0x28] sm:$0xff]  ;;  %v297_v7 = vld [vmem:[%s428_s3 + $0x20] sm:$0xff]  ;;  %v288_v8 = vld [vmem:[%s426_s1 + $0x18] sm:$0xff] }
   0x6   :  { %98 = vmatpush.bf16.msra.mxu0 %v291_v1  ;;  %v287_v9 = vld [vmem:[%s426_s1 + $0x10] sm:$0xff]  ;;  %v286_v10 = vld [vmem:[%s426_s1 + $0x8] sm:$0xff]  ;;  %v285_v11 = vld [vmem:[%s426_s1] sm:$0xff] }
   0x7   :  { %183 = vmatpush.bf16.msra.mxu1 %v299_v3  ;;  %v284_v12 = vld [vmem:[%s425_s0] sm:$0xff]  ;;  %v296_v13 = vld [vmem:[%s428_s3 + $0x18] sm:$0xff]  ;;  %v295_v14 = vld [vmem:[%s428_s3 + $0x10] sm:$0xff] }
   0x8   :  { %v294_v15 = vld [vmem:[%s428_s3 + $0x8] sm:$0xff]  ;;  %v293_v16 = vld [vmem:[%s428_s3] sm:$0xff]  ;;  %s332_s3 = smov [#allocation2]  }
   0x9   :  { %v304_v18 = vld [vmem:[%s427_s2] ss:$0 sm:$0xff]  ;;  %s202_s29 = sshll.u32 %s332_s3, 4  ;;  %s204_s2 = sshll.u32 %s430_s5, 4  ;;  %s203_s29 = int_to_ptr.vmem [resolvable:$true] %s202_s29  ;;  %s205_s2 = int_to_ptr.hbm [resolvable:$true] %s204_s2 }
   0xa   :  { %99 = vmatpush.bf16.msra.mxu0 %v290_v4  ;;  %v305_v25 = vld [vmem:[%s429_s4] ss:$0 sm:$0xff] }
   0xb   :  { %184 = vmatpush.bf16.msra.mxu1 %v298_v5 }
   0xe   :  { %100 = vmatpush.bf16.msra.mxu0 %v289_v6 }
   0xf   :  { %185 = vmatpush.bf16.msra.mxu1 %v297_v7 }
  0x12   :  { %101 = vmatpush.bf16.msra.mxu0 %v288_v8 }
  0x13   :  { %186 = vmatpush.bf16.msra.mxu1 %v296_v13 }
  0x16   :  { %102 = vmatpush.bf16.msra.mxu0 %v287_v9 }
  0x17   :  { %187 = vmatpush.bf16.msra.mxu1 %v295_v14 }
  0x1a   :  { %103 = vmatpush.bf16.msra.mxu0 %v286_v10 }
  0x1b   :  { %188 = vmatpush.bf16.msra.mxu1 %v294_v15 }
  0x1e   :  { %104 = vmatpush.bf16.msra.mxu0 %v285_v11 }
  0x1f   :  { %189 = vmatpush.bf16.msra.mxu1 %v293_v16 }
  0x21   :  { %105 = vmatmul.bf16.vlgmr.msra.gmra.mxu0 %v284_v12 }
  0x9e   :  { %v106_v17 = vpop.f32.mrf.mxu0 }
  0x9f   :  { %v107_v19 = vadd.f32 %v304_v18, %v106_v17 }
  0xa1   :  { %v111_v22 = vmax.f32 %v107_v19, 0.0 }
  0xa6   :  { %v108_v20 = vpop.f32.mrf.mxu0 }
  0xa7   :  { %v109_v21 = vadd.f32 %v304_v18, %v108_v20 }
  0xa9   :  { %v112_v23 = vmax.f32 %v109_v21, 0.0 }
  0xab   :  { %v113_v24 = vpack.c.bf16 %v112_v23, %v111_v22 }
  0xad   :  { %190 = vmatmul.bf16.vlgmr.msra.gmra.mxu1 %v113_v24 }
 0x12a   :  { %v191_v26 = vpop.f32.mrf.mxu1 }
 0x12b   :  { %v192_v27 = vadd.f32 %v305_v25, %v191_v26 }
 0x12d   :  { %196 = vst [vmem:[#allocation2] sm:$0xff] %v192_v27 }
 0x132   :  { %v193_v28 = vpop.f32.mrf.mxu1 }
 0x133   :  { %v194_v29 = vadd.f32 %v305_v25, %v193_v28 }
 0x135   :  { %197 = vst [vmem:[#allocation2 + $0x8] sm:$0xff] %v194_v29 }
 0x136   :  { %210 = dma.vmem_to_hbm [thread:$0]  %s203_s29, 256, %s205_s2, [#allocation3], %s333_s7, %s333_s7, %s334_s8  }
 0x137   :  { %330 = dma.done.wait [#allocation3], 256  }
 0x138   :  { %331 = vsyncadd [#allocation3], 4294967040 }
 0x139   :  { %215 = vsyncpa [#allocation3], 1 }

// kernel: autoencoder_forward.1
= control target key start
LH: loop header
LB: loop body
LE: loop exit
PB: predicated region body
PF: predicated region fallthrough
CT: control target
= control target key end

     0   :  { %s425_s0 = inlined_call_operand.vmem [shape: bf16[16,128], index: 0, kind: input, shape index: {}]   ;;  %s426_s1 = inlined_call_operand.vmem [shape: bf16[128,128], index: 1, kind: input, shape index: {}]   ;;  %s427_s2 = inlined_call_operand.vmem [shape: f32[1,128], index: 2, kind: input, shape index: {}]   ;;  %s428_s3 = inlined_call_operand.vmem [shape: bf16[128,128], index: 3, kind: input, shape index: {}]   ;;  %s429_s4 = inlined_call_operand.vmem [shape: f32[1,128], index: 4, kind: input, shape index: {}]   ;;  %s430_s5 = inlined_call_operand.hbm [shape: f32[16,128], index: 5, kind: output, shape index: {}]  }
   0x1   :  { %v292_v0 = vld [vmem:[%s426_s1 + $0x38] sm:$0xff]  ;;  %v291_v1 = vld [vmem:[%s426_s1 + $0x30] sm:$0xff] }
   0x2   :  { %97 = vmatpush.bf16.msra.mxu0 %v292_v0  ;;  %v300_v2 = vld [vmem:[%s428_s3 + $0x38] sm:$0xff]  ;;  %v299_v3 = vld [vmem:[%s428_s3 + $0x30] sm:$0xff] }
   0x3   :  { %182 = vmatpush.bf16.msra.mxu1 %v300_v2 }
   0x4   :  { %10 = vsyncpa [#allocation3], 0  ;;  %v290_v4 = vld [vmem:[%s426_s1 + $0x28] sm:$0xff]  ;;  %v289_v6 = vld [vmem:[%s426_s1 + $0x20] sm:$0xff]  ;;  %s333_s7 = smov 128   ;;  %s334_s8 = smov 8  }
   0x5   :  { %v298_v5 = vld [vmem:[%s428_s3 + $0x28] sm:$0xff]  ;;  %v297_v7 = vld [vmem:[%s428_s3 + $0x20] sm:$0xff]  ;;  %v288_v8 = vld [vmem:[%s426_s1 + $0x18] sm:$0xff] }
   0x6   :  { %98 = vmatpush.bf16.msra.mxu0 %v291_v1  ;;  %v287_v9 = vld [vmem:[%s426_s1 + $0x10] sm:$0xff]  ;;  %v286_v10 = vld [vmem:[%s426_s1 + $0x8] sm:$0xff]  ;;  %v285_v11 = vld [vmem:[%s426_s1] sm:$0xff] }
   0x7   :  { %183 = vmatpush.bf16.msra.mxu1 %v299_v3  ;;  %v284_v12 = vld [vmem:[%s425_s0] sm:$0xff]  ;;  %v296_v13 = vld [vmem:[%s428_s3 + $0x18] sm:$0xff]  ;;  %v295_v14 = vld [vmem:[%s428_s3 + $0x10] sm:$0xff] }
   0x8   :  { %v294_v15 = vld [vmem:[%s428_s3 + $0x8] sm:$0xff]  ;;  %v293_v16 = vld [vmem:[%s428_s3] sm:$0xff]  ;;  %s332_s3 = smov [#allocation2]  }
   0x9   :  { %v304_v18 = vld [vmem:[%s427_s2] ss:$0 sm:$0xff]  ;;  %s202_s29 = sshll.u32 %s332_s3, 4  ;;  %s204_s2 = sshll.u32 %s430_s5, 4  ;;  %s203_s29 = int_to_ptr.vmem [resolvable:$true] %s202_s29  ;;  %s205_s2 = int_to_ptr.hbm [resolvable:$true] %s204_s2 }
   0xa   :  { %99 = vmatpush.bf16.msra.mxu0 %v290_v4  ;;  %v305_v25 = vld [vmem:[%s429_s4] ss:$0 sm:$0xff] }
   0xb   :  { %184 = vmatpush.bf16.msra.mxu1 %v298_v5 }
   0xe   :  { %100 = vmatpush.bf16.msra.mxu0 %v289_v6 }
   0xf   :  { %185 = vmatpush.bf16.msra.mxu1 %v297_v7 }
  0x12   :  { %101 = vmatpush.bf16.msra.mxu0 %v288_v8 }
  0x13   :  { %186 = vmatpush.bf16.msra.mxu1 %v296_v13 }
  0x16   :  { %102 = vmatpush.bf16.msra.mxu0 %v287_v9 }
  0x17   :  { %187 = vmatpush.bf16.msra.mxu1 %v295_v14 }
  0x1a   :  { %103 = vmatpush.bf16.msra.mxu0 %v286_v10 }
  0x1b   :  { %188 = vmatpush.bf16.msra.mxu1 %v294_v15 }
  0x1e   :  { %104 = vmatpush.bf16.msra.mxu0 %v285_v11 }
  0x1f   :  { %189 = vmatpush.bf16.msra.mxu1 %v293_v16 }
  0x21   :  { %105 = vmatmul.bf16.vlgmr.msra.gmra.mxu0 %v284_v12 }
  0x9e   :  { %v106_v17 = vpop.f32.mrf.mxu0 }
  0x9f   :  { %v107_v19 = vadd.f32 %v304_v18, %v106_v17 }
  0xa1   :  { %v111_v22 = vmax.f32 %v107_v19, 0.0 }
  0xa6   :  { %v108_v20 = vpop.f32.mrf.mxu0 }
  0xa7   :  { %v109_v21 = vadd.f32 %v304_v18, %v108_v20 }
  0xa9   :  { %v112_v23 = vmax.f32 %v109_v21, 0.0 }
  0xab   :  { %v113_v24 = vpack.c.bf16 %v112_v23, %v111_v22 }
  0xad   :  { %190 = vmatmul.bf16.vlgmr.msra.gmra.mxu1 %v113_v24 }
 0x12a   :  { %v191_v26 = vpop.f32.mrf.mxu1 }
 0x12b   :  { %v192_v27 = vadd.f32 %v305_v25, %v191_v26 }
 0x12d   :  { %196 = vst [vmem:[#allocation2] sm:$0xff] %v192_v27 }
 0x132   :  { %v193_v28 = vpop.f32.mrf.mxu1 }
 0x133   :  { %v194_v29 = vadd.f32 %v305_v25, %v193_v28 }
 0x135   :  { %197 = vst [vmem:[#allocation2 + $0x8] sm:$0xff] %v194_v29 }
 0x136   :  { %210 = dma.vmem_to_hbm [thread:$0]  %s203_s29, 256, %s205_s2, [#allocation3], %s333_s7, %s333_s7, %s334_s8  }
 0x137   :  { %330 = dma.done.wait [#allocation3], 256  }
 0x138   :  { %331 = vsyncadd [#allocation3], 4294967040 }
 0x139   :  { %215 = vsyncpa [#allocation3], 1 }

</bundles_post_ra>
